<compile_context>
chip_gen: v5e
topology: v5e:2x2
jax: 0.10.0
libtpu: 0.0.40
codegen_flags: <defaults>
</compile_context>

<pallas_src>
import jax
import jax.numpy as jnp
from jax.experimental import pallas as pl
from jax.experimental.pallas import tpu as pltpu

ALPHA = 0.25          # focal alpha
GAMMA = 2.0           # focal gamma (== 2.0, implemented as explicit squares)
EPS = 1e-7
L1 = 1.0              # jaccard weight
LANES = 128
MAX_BLOCK_ROWS = 2048  # 2048 * 128 * 4 B = 1 MiB per input block


def _make_partial_kernel(block_rows: int, valid_rows: int):
    """Kernel computing per-lane partial sums for one (block_rows, 128) tile."""
    needs_row_mask = (valid_rows % block_rows) != 0

    def kernel(pred_ref, tgt_ref, msk_ref, out_ref):
        x = pred_ref[...].astype(jnp.float32)
        t = tgt_ref[...].astype(jnp.float32)
        m = msk_ref[...].astype(jnp.float32)

        if needs_row_mask:
            # The last block overhangs the array; zero out garbage rows before
            # any arithmetic so no NaN/Inf can leak into the sums.
            row0 = pl.program_id(0) * block_rows
            rows = row0 + jax.lax.broadcasted_iota(
                jnp.int32, (block_rows, LANES), 0)
            valid = rows < valid_rows
            zero = jnp.float32(0.0)
            x = jnp.where(valid, x, zero)
            t = jnp.where(valid, t, zero)
            m = jnp.where(valid, m, zero)

        # 3 EUP transcendentals / element total.
        sp = jax.nn.softplus(-x)          # = -log(sigmoid(x)), stable
        neg_log_p = sp                    # -log(p)
        neg_log_1mp = x + sp              # -log(1 - p)
        p = jnp.exp(-sp)                  # = sigmoid(x)

        one_m_p = 1.0 - p
        focal = m * (
            ALPHA * (one_m_p * one_m_p) * t * neg_log_p
            + (1.0 - ALPHA) * (p * p) * (1.0 - t) * neg_log_1mp
        )

        pm = p * m
        inter = pm * t                    # p * t * mask
        psum = pm + t * m                 # (p + t) * mask

        # Per-lane partial sums; the scalar reduce happens outside the kernel.
        out_ref[0, 0:1, :] = jnp.sum(focal, axis=0, keepdims=True)
        out_ref[0, 1:2, :] = jnp.sum(m, axis=0, keepdims=True)
        out_ref[0, 2:3, :] = jnp.sum(inter, axis=0, keepdims=True)
        out_ref[0, 3:4, :] = jnp.sum(psum, axis=0, keepdims=True)

    return kernel


def _as_rows(x: jax.Array) -> jax.Array:
    """Flatten to (R, 128) without changing dtype; minimal pad if ragged."""
    flat = x.reshape(-1)
    n = flat.shape[0]
    rem = n % LANES
    if rem:
        # TODO(synk): pad copy only for element counts not divisible by 128;
        # could be removed entirely with in-kernel element masking.
        flat = jnp.pad(flat, (0, LANES - rem))
    return flat.reshape(-1, LANES)


@jax.jit
def hybird_v6_loss(pred: jax.Array, target: jax.Array, mask: jax.Array) -> jax.Array:
    """HybirdV6 forward: scalar loss. pred/target/mask are NCHW arrays."""
    p2d = _as_rows(pred)
    t2d = _as_rows(target)
    m2d = _as_rows(mask)   # padded tail has mask == 0 -> contributes nothing

    rows = p2d.shape[0]
    block_rows = rows if rows <= MAX_BLOCK_ROWS else MAX_BLOCK_ROWS
    grid_r = -(-rows // block_rows)

    in_block = pl.BlockSpec((block_rows, LANES), lambda i: (i, 0))
    out_block = pl.BlockSpec((1, 4, LANES), lambda i: (i, 0, 0))

    partials = pl.pallas_call(
        _make_partial_kernel(block_rows, rows),
        out_shape=jax.ShapeDtypeStruct((grid_r, 4, LANES), jnp.float32),
        grid_spec=pltpu.PrefetchScalarGridSpec(
            num_scalar_prefetch=0,
            grid=(grid_r,),
            in_specs=[in_block, in_block, in_block],
            out_specs=out_block,
        ),
        compiler_params=pltpu.CompilerParams(
            dimension_semantics=("parallel",),
        ),
    )(p2d, t2d, m2d)

    sums = jnp.sum(partials, axis=(0, 2))          # (4,)
    focal_sum, mask_sum, inter, pt_sum = sums[0], sums[1], sums[2], sums[3]

    focal = focal_sum / (mask_sum + EPS)
    union = pt_sum - inter
    jaccard = 1.0 - (inter + EPS) / (union + EPS)
    return (focal + L1 * jaccard) / (1.0 + L1)


def _reference_loss(pred, target, mask):
    """Pure-JAX reference for validation."""
    x = pred.astype(jnp.float32)
    t = target.astype(jnp.float32)
    m = mask.astype(jnp.float32)
    p = jax.nn.sigmoid(x)
    log_p = -jax.nn.softplus(-x)
    log_1mp = -jax.nn.softplus(x)
    focal_term = (ALPHA * (1.0 - p) ** 2 * t * (-log_p)
                  + (1.0 - ALPHA) * p ** 2 * (1.0 - t) * (-log_1mp))
    focal = jnp.sum(m * focal_term) / (jnp.sum(m) + EPS)
    inter = jnp.sum(p * t * m)
    union = jnp.sum((p + t) * m) - inter
    jac = 1.0 - (inter + EPS) / (union + EPS)
    return (focal + L1 * jac) / (1.0 + L1)


if __name__ == "__main__":
    key = jax.random.PRNGKey(0)

    shapes = [
        (2, 4, 16, 16),     # small: single block, no masking
        (1, 3, 320, 320),   # multi-block grid with ragged last block
        (1, 1, 7, 9),       # ragged element count (pad path)
    ]
    for idx, shape in enumerate(shapes):
        k1, k2, k3, key = jax.random.split(jax.random.fold_in(key, idx), 4)
        pred = jax.random.normal(k1, shape, dtype=jnp.float32)
        target = jax.random.bernoulli(k2, p=0.5, shape=shape).astype(jnp.float32)
        mask = jax.random.bernoulli(k3, p=0.9, shape=shape).astype(jnp.float32)

        loss = jax.block_until_ready(hybird_v6_loss(pred, target, mask))
        ref = _reference_loss(pred, target, mask)
        assert jnp.isfinite(loss), f"loss is not finite for shape {shape}"
        assert jnp.allclose(loss, ref, rtol=1e-4, atol=1e-5), (shape, loss, ref)

    print("KERNEL_OK")
</pallas_src>

<mosaic_0001>
module attributes {stable_mosaic.version = 11 : i64} {
  func.func @kernel(%arg0: i32, %arg1: memref<16x128xf32, #tpu.memory_space<vmem>>, %arg2: memref<16x128xf32, #tpu.memory_space<vmem>>, %arg3: memref<16x128xf32, #tpu.memory_space<vmem>>, %arg4: memref<1x4x128xf32, #tpu.memory_space<vmem>>) attributes {dimension_semantics = [#tpu.dimension_semantics<parallel>], iteration_bounds = array<i64: 1>, scalar_prefetch = 0 : i64, scratch_operands = 0 : i64, tpu.core_type = #tpu.core_type<tc>, window_params = [{transform_indices = @transform_0, window_bounds = array<i64: 16, 128>}, {transform_indices = @transform_1, window_bounds = array<i64: 16, 128>}, {transform_indices = @transform_2, window_bounds = array<i64: 16, 128>}, {transform_indices = @transform_3, window_bounds = array<i64: 1, 4, 128>}]} {
    %c0 = arith.constant 0 : index
    %c0_0 = arith.constant 0 : index
    %0 = vector.load %arg1[%c0, %c0_0] : memref<16x128xf32, #tpu.memory_space<vmem>>, vector<16x128xf32>
    %c0_1 = arith.constant 0 : index
    %c0_2 = arith.constant 0 : index
    %1 = vector.load %arg2[%c0_1, %c0_2] : memref<16x128xf32, #tpu.memory_space<vmem>>, vector<16x128xf32>
    %c0_3 = arith.constant 0 : index
    %c0_4 = arith.constant 0 : index
    %2 = vector.load %arg3[%c0_3, %c0_4] : memref<16x128xf32, #tpu.memory_space<vmem>>, vector<16x128xf32>
    %cst = arith.constant 0.000000e+00 : f32
    %3 = vector.broadcast %cst : f32 to vector<16x128xf32>
    %4 = arith.subf %3, %0 : vector<16x128xf32>
    %cst_5 = arith.constant 0.000000e+00 : f32
    %5 = vector.broadcast %cst_5 : f32 to vector<16x128xf32>
    %6 = arith.maximumf %4, %5 : vector<16x128xf32>
    %7 = vector.broadcast %cst_5 : f32 to vector<16x128xf32>
    %8 = arith.subf %4, %7 : vector<16x128xf32>
    %9 = arith.cmpf one, %8, %8 : vector<16x128xf32>
    %10 = vector.broadcast %cst_5 : f32 to vector<16x128xf32>
    %11 = arith.addf %4, %10 : vector<16x128xf32>
    %12 = math.absf %8 : vector<16x128xf32>
    %cst_6 = arith.constant 0.000000e+00 : f32
    %13 = vector.broadcast %cst_6 : f32 to vector<16x128xf32>
    %14 = arith.subf %13, %12 : vector<16x128xf32>
    %15 = math.exp %14 : vector<16x128xf32>
    %16 = math.log1p %15 : vector<16x128xf32>
    %17 = arith.addf %6, %16 : vector<16x128xf32>
    %18 = arith.select %9, %11, %17 : vector<16x128xi1>, vector<16x128xf32>
    %19 = arith.addf %0, %18 : vector<16x128xf32>
    %cst_7 = arith.constant 0.000000e+00 : f32
    %20 = vector.broadcast %cst_7 : f32 to vector<16x128xf32>
    %21 = arith.subf %20, %18 : vector<16x128xf32>
    %22 = math.exp %21 : vector<16x128xf32>
    %cst_8 = arith.constant 1.000000e+00 : f32
    %23 = vector.broadcast %cst_8 : f32 to vector<16x128xf32>
    %24 = arith.subf %23, %22 : vector<16x128xf32>
    %25 = arith.mulf %24, %24 : vector<16x128xf32>
    %cst_9 = arith.constant 2.500000e-01 : f32
    %26 = vector.broadcast %cst_9 : f32 to vector<16x128xf32>
    %27 = arith.mulf %26, %25 : vector<16x128xf32>
    %28 = arith.mulf %27, %1 : vector<16x128xf32>
    %29 = arith.mulf %28, %18 : vector<16x128xf32>
    %30 = arith.mulf %22, %22 : vector<16x128xf32>
    %cst_10 = arith.constant 7.500000e-01 : f32
    %31 = vector.broadcast %cst_10 : f32 to vector<16x128xf32>
    %32 = arith.mulf %31, %30 : vector<16x128xf32>
    %cst_11 = arith.constant 1.000000e+00 : f32
    %33 = vector.broadcast %cst_11 : f32 to vector<16x128xf32>
    %34 = arith.subf %33, %1 : vector<16x128xf32>
    %35 = arith.mulf %32, %34 : vector<16x128xf32>
    %36 = arith.mulf %35, %19 : vector<16x128xf32>
    %37 = arith.addf %29, %36 : vector<16x128xf32>
    %38 = arith.mulf %2, %37 : vector<16x128xf32>
    %39 = arith.mulf %22, %2 : vector<16x128xf32>
    %40 = arith.mulf %39, %1 : vector<16x128xf32>
    %41 = arith.mulf %1, %2 : vector<16x128xf32>
    %42 = arith.addf %39, %41 : vector<16x128xf32>
    %cst_12 = arith.constant dense<0.000000e+00> : vector<128xf32>
    %43 = vector.multi_reduction <add>, %38, %cst_12 [0] : vector<16x128xf32> to vector<128xf32>
    %44 = vector.shape_cast %43 : vector<128xf32> to vector<1x128xf32>
    %c0_13 = arith.constant 0 : index
    %c0_14 = arith.constant 0 : index
    %c0_15 = arith.constant 0 : index
    %45 = vector.load %arg4[%c0_13, %c0_14, %c0_15] : memref<1x4x128xf32, #tpu.memory_space<vmem>>, vector<1x1x128xf32>
    %46 = vector.shape_cast %45 : vector<1x1x128xf32> to vector<1x128xf32>
    %47 = vector.shape_cast %44 : vector<1x128xf32> to vector<1x1x128xf32>
    tpu.vector_store %arg4[%c0_13, %c0_14, %c0_15], %47 {strides = array<i32>} : memref<1x4x128xf32, #tpu.memory_space<vmem>>, vector<1x1x128xf32>,
    %cst_16 = arith.constant dense<0.000000e+00> : vector<128xf32>
    %48 = vector.multi_reduction <add>, %2, %cst_16 [0] : vector<16x128xf32> to vector<128xf32>
    %49 = vector.shape_cast %48 : vector<128xf32> to vector<1x128xf32>
    %c0_17 = arith.constant 0 : index
    %c1 = arith.constant 1 : index
    %c0_18 = arith.constant 0 : index
    %50 = vector.load %arg4[%c0_17, %c1, %c0_18] : memref<1x4x128xf32, #tpu.memory_space<vmem>>, vector<1x1x128xf32>
    %51 = vector.shape_cast %50 : vector<1x1x128xf32> to vector<1x128xf32>
    %52 = vector.shape_cast %49 : vector<1x128xf32> to vector<1x1x128xf32>
    tpu.vector_store %arg4[%c0_17, %c1, %c0_18], %52 {strides = array<i32>} : memref<1x4x128xf32, #tpu.memory_space<vmem>>, vector<1x1x128xf32>,
    %cst_19 = arith.constant dense<0.000000e+00> : vector<128xf32>
    %53 = vector.multi_reduction <add>, %40, %cst_19 [0] : vector<16x128xf32> to vector<128xf32>
    %54 = vector.shape_cast %53 : vector<128xf32> to vector<1x128xf32>
    %c0_20 = arith.constant 0 : index
    %c2 = arith.constant 2 : index
    %c0_21 = arith.constant 0 : index
    %55 = vector.load %arg4[%c0_20, %c2, %c0_21] : memref<1x4x128xf32, #tpu.memory_space<vmem>>, vector<1x1x128xf32>
    %56 = vector.shape_cast %55 : vector<1x1x128xf32> to vector<1x128xf32>
    %57 = vector.shape_cast %54 : vector<1x128xf32> to vector<1x1x128xf32>
    tpu.vector_store %arg4[%c0_20, %c2, %c0_21], %57 {strides = array<i32>} : memref<1x4x128xf32, #tpu.memory_space<vmem>>, vector<1x1x128xf32>,
    %cst_22 = arith.constant dense<0.000000e+00> : vector<128xf32>
    %58 = vector.multi_reduction <add>, %42, %cst_22 [0] : vector<16x128xf32> to vector<128xf32>
    %59 = vector.shape_cast %58 : vector<128xf32> to vector<1x128xf32>
    %c0_23 = arith.constant 0 : index
    %c3 = arith.constant 3 : index
    %c0_24 = arith.constant 0 : index
    %60 = vector.load %arg4[%c0_23, %c3, %c0_24] : memref<1x4x128xf32, #tpu.memory_space<vmem>>, vector<1x1x128xf32>
    %61 = vector.shape_cast %60 : vector<1x1x128xf32> to vector<1x128xf32>
    %62 = vector.shape_cast %59 : vector<1x128xf32> to vector<1x1x128xf32>
    tpu.vector_store %arg4[%c0_23, %c3, %c0_24], %62 {strides = array<i32>} : memref<1x4x128xf32, #tpu.memory_space<vmem>>, vector<1x1x128xf32>,
    return
  }
  func.func @transform_0(%arg0: i32) -> (i32, i32) {
    %c0_i32 = arith.constant 0 : i32
    %c0_i32_0 = arith.constant 0 : i32
    return %arg0, %c0_i32 : i32, i32
  }
  func.func @transform_1(%arg0: i32) -> (i32, i32) {
    %c0_i32 = arith.constant 0 : i32
    %c0_i32_0 = arith.constant 0 : i32
    return %arg0, %c0_i32 : i32, i32
  }
  func.func @transform_2(%arg0: i32) -> (i32, i32) {
    %c0_i32 = arith.constant 0 : i32
    %c0_i32_0 = arith.constant 0 : i32
    return %arg0, %c0_i32 : i32, i32
  }
  func.func @transform_3(%arg0: i32) -> (i32, i32, i32) {
    %c0_i32 = arith.constant 0 : i32
    %c0_i32_0 = arith.constant 0 : i32
    %c0_i32_1 = arith.constant 0 : i32
    return %arg0, %c0_i32, %c0_i32_0 : i32, i32, i32
  }
}

</mosaic_0001>

<bundles_post_ra>
// kernel: hybird_v6_loss.1
= control target key start
LH: loop header
LB: loop body
LE: loop exit
PB: predicated region body
PF: predicated region fallthrough
CT: control target
= control target key end

     0   :  { %s216_s0 = inlined_call_operand.vmem [shape: f32[16,128], index: 0, kind: input, shape index: {}]   ;;  %s217_s2 = inlined_call_operand.vmem [shape: f32[16,128], index: 2, kind: input, shape index: {}]   ;;  %s218_s1 = inlined_call_operand.vmem [shape: f32[16,128], index: 1, kind: input, shape index: {}]   ;;  %s219_s3 = inlined_call_operand.vmem [shape: f32[1,4,128], index: 3, kind: output, shape index: {}]  }
   0x1   :  { %v169_v0 = vld [vmem:[%s216_s0] sm:$0xff]  ;;  %v174_v1 = vld [vmem:[%s216_s0 + $0x8] sm:$0xff] }
   0x2   :  { %v20_v2 = vsub.f32 0.0, %v169_v0  ;;  %v21_v3 = vsub.f32 0.0, %v174_v1  ;;  %v181_v22 = vld [vmem:[%s217_s2] sm:$0xff]  ;;  %v186_v23 = vld [vmem:[%s217_s2 + $0x8] sm:$0xff] }
   0x3   :  { %v106_v29 = vadd.f32 %v186_v23, %v181_v22  ;;  %v16_v47 = vld [vmem:[%s218_s1] sm:$0xff]  ;;  %v17_v48 = vld [vmem:[%s218_s1 + $0x8] sm:$0xff] }
   0x4   :  { %v28_v4 = vand.u32 2147483647, %v20_v2  ;;  %v29_v5 = vand.u32 2147483647, %v21_v3  ;;  %v22_v24 = vmax.f32 %v20_v2, 0.0  ;;  %v23_v27 = vmax.f32 %v21_v3, 0.0 }
   0x5   :  { %vm24_vm2 = vcmp.ne.f32.partialorder %v20_v2, %v20_v2  ;;  %v107_v32 = vrot.slane %v106_v29, 4  ;;  %vm25_vm3 = vcmp.ne.f32.partialorder %v21_v3, %v21_v3  ;;  %v94_v49 = vmul.f32 %v181_v22, %v16_v47 }
   0x6   :  { %v30_v6 = vsub.f32 0.0, %v28_v4  ;;  %v31_v7 = vsub.f32 0.0, %v29_v5  ;;  %v80_v51 = vsub.f32 1.0, %v16_v47  ;;  %v81_v52 = vsub.f32 1.0, %v17_v48 }
   0x7   :  { %v108_v36 = vadd.f32 %v107_v32, %v106_v29  ;;  %v95_v53 = vmul.f32 %v186_v23, %v17_v48 }
   0x8   :  { %v32_v8 = vmul.f32 1.442695, %v30_v6  ;;  %v34_v9 = vmul.f32 1.442695, %v31_v7 }
   0x9   :  { %v109_v40 = vrot.slane %v108_v36, 2 }
   0xa   :  { %134 = vpow2.f32 %v32_v8 }
   0xb   :  { %136 = vpow2.f32 %v34_v9  ;;  %v110_v43 = vadd.f32 %v109_v40, %v108_v36 }
   0xd   :  { %v111_v45 = vrot.slane %v110_v43, 1 }
   0xf   :  { %v112_v46 = vadd.f32 %v111_v45, %v110_v43 }
  0x10   :  { %v135_v10 = vpop.eup %134 }
  0x11   :  { %v137_v11 = vpop.eup %136  ;;  %v36_v12 = vadd.f32 1.0, %v135_v10  ;;  %v39_v13 = vmul.f32 -0.5, %v135_v10  ;;  %v42_v17 = vand.u32 2147483647, %v135_v10  ;;  %113 = vst [vmem:[%s219_s3 + $0x1] sm:$0x1] %v112_v46 }
  0x12   :  { %v45_v14 = vadd.f32 1.0, %v137_v11  ;;  %v48_v15 = vmul.f32 -0.5, %v137_v11  ;;  %v51_v19 = vand.u32 2147483647, %v137_v11 }
  0x13   :  { %138 = vlog2.f32 %v36_v12  ;;  %v40_v16 = vadd.f32 1.0, %v39_v13  ;;  %vm43_vm0 = vcmp.lt.f32.partialorder %v42_v17, 0.0004427343 }
  0x14   :  { %140 = vlog2.f32 %v45_v14  ;;  %v49_v18 = vadd.f32 1.0, %v48_v15  ;;  %vm52_vm1 = vcmp.lt.f32.partialorder %v51_v19, 0.0004427343 }
  0x15   :  { %v41_v20 = vmul.f32 %v135_v10, %v40_v16 }
  0x16   :  { %v50_v25 = vmul.f32 %v137_v11, %v49_v18 }
  0x19   :  { %v139_v21 = vpop.eup %138 }
  0x1a   :  { %v141_v26 = vpop.eup %140  ;;  %v38_v28 = vmul.f32 0.6931472, %v139_v21 }
  0x1b   :  { %v47_v30 = vmul.f32 0.6931472, %v141_v26 }
  0x1c   :  { %v44_v31 = vsel %vm43_vm0, %v41_v20, %v38_v28 }
  0x1d   :  { %v53_v33 = vsel %vm52_vm1, %v50_v25, %v47_v30  ;;  %v54_v34 = vadd.f32 %v44_v31, %v22_v24 }
  0x1e   :  { %v55_v35 = vadd.f32 %v53_v33, %v23_v27 }
  0x1f   :  { %v56_v37 = vsel %vm24_vm2, %v20_v2, %v54_v34 }
  0x20   :  { %v57_v38 = vsel %vm25_vm3, %v21_v3, %v55_v35  ;;  %v60_v39 = vsub.f32 0.0, %v56_v37  ;;  %v58_v55 = vadd.f32 %v56_v37, %v169_v0 }
  0x21   :  { %v61_v41 = vsub.f32 0.0, %v57_v38  ;;  %v59_v59 = vadd.f32 %v57_v38, %v174_v1 }
  0x22   :  { %v62_v42 = vmul.f32 1.442695, %v60_v39 }
  0x23   :  { %v64_v44 = vmul.f32 1.442695, %v61_v41 }
  0x24   :  { %142 = vpow2.f32 %v62_v42 }
  0x25   :  { %144 = vpow2.f32 %v64_v44 }
  0x2a   :  { %v143_v50 = vpop.eup %142 }
  0x2b   :  { %v145_v54 = vpop.eup %144  ;;  %v66_v56 = vsub.f32 1.0, %v143_v50  ;;  %v76_v57 = vmul.f32 %v143_v50, %v143_v50  ;;  %v90_v58 = vmul.f32 %v143_v50, %v181_v22 }
  0x2c   :  { %v67_v60 = vsub.f32 1.0, %v145_v54  ;;  %v77_v61 = vmul.f32 %v145_v54, %v145_v54  ;;  %v91_v62 = vmul.f32 %v145_v54, %v186_v23 }
  0x2d   :  { %v68_v63 = vmul.f32 %v66_v56, %v66_v56  ;;  %v78_v2 = vmul.f32 0.75, %v76_v57  ;;  %v92_v3 = vmul.f32 %v90_v58, %v16_v47  ;;  %v96_v4 = vadd.f32 %v94_v49, %v90_v58 }
  0x2e   :  { %v69_v5 = vmul.f32 %v67_v60, %v67_v60  ;;  %v79_v6 = vmul.f32 0.75, %v77_v61  ;;  %v93_v7 = vmul.f32 %v91_v62, %v17_v48  ;;  %v97_v8 = vadd.f32 %v95_v53, %v91_v62 }
  0x2f   :  { %v70_v9 = vmul.f32 0.25, %v68_v63  ;;  %v82_v0 = vmul.f32 %v80_v51, %v78_v2 }
  0x30   :  { %v71_v10 = vmul.f32 0.25, %v69_v5  ;;  %v83_v11 = vmul.f32 %v81_v52, %v79_v6  ;;  %v114_v12 = vadd.f32 %v93_v7, %v92_v3  ;;  %v122_v13 = vadd.f32 %v97_v8, %v96_v4 }
  0x31   :  { %v72_v14 = vmul.f32 %v70_v9, %v16_v47  ;;  %v84_v1 = vmul.f32 %v82_v0, %v58_v55 }
  0x32   :  { %v73_v15 = vmul.f32 %v71_v10, %v17_v48  ;;  %v85_v16 = vmul.f32 %v83_v11, %v59_v59  ;;  %v115_v17 = vrot.slane %v114_v12, 4  ;;  %v123_v18 = vrot.slane %v122_v13, 4 }
  0x33   :  { %v74_v19 = vmul.f32 %v72_v14, %v56_v37 }
  0x34   :  { %v75_v20 = vmul.f32 %v73_v15, %v57_v38  ;;  %v116_v21 = vadd.f32 %v115_v17, %v114_v12  ;;  %v124_v24 = vadd.f32 %v123_v18, %v122_v13 }
  0x35   :  { %v86_v25 = vadd.f32 %v84_v1, %v74_v19 }
  0x36   :  { %v87_v26 = vadd.f32 %v85_v16, %v75_v20  ;;  %v117_v27 = vrot.slane %v116_v21, 2  ;;  %v125_v28 = vrot.slane %v124_v24, 2 }
  0x37   :  { %v88_v29 = vmul.f32 %v86_v25, %v181_v22 }
  0x38   :  { %v89_v30 = vmul.f32 %v87_v26, %v186_v23  ;;  %v118_v31 = vadd.f32 %v117_v27, %v116_v21  ;;  %v126_v32 = vadd.f32 %v125_v28, %v124_v24 }
  0x3a   :  { %v98_v33 = vadd.f32 %v89_v30, %v88_v29  ;;  %v119_v34 = vrot.slane %v118_v31, 1  ;;  %v127_v35 = vrot.slane %v126_v32, 1 }
  0x3c   :  { %v99_v36 = vrot.slane %v98_v33, 4  ;;  %v120_v39 = vadd.f32 %v119_v34, %v118_v31  ;;  %v128_v40 = vadd.f32 %v127_v35, %v126_v32 }
  0x3e   :  { %v100_v37 = vadd.f32 %v99_v36, %v98_v33  ;;  %121 = vst [vmem:[%s219_s3 + $0x2] sm:$0x1] %v120_v39 }
  0x3f   :  { %129 = vst [vmem:[%s219_s3 + $0x3] sm:$0x1] %v128_v40 }
  0x40   :  { %v101_v22 = vrot.slane %v100_v37, 2 }
  0x42   :  { %v102_v38 = vadd.f32 %v101_v22, %v100_v37 }
  0x44   :  { %v103_v23 = vrot.slane %v102_v38, 1 }
  0x46   :  { %v104_v41 = vadd.f32 %v103_v23, %v102_v38 }
  0x48   :  { %105 = vst [vmem:[%s219_s3] sm:$0x1] %v104_v41 }

</bundles_post_ra>
